<compile_context>
chip_gen: v7x
topology: tpu7x:2x2x1
jax: 0.10.0
libtpu: 0.0.40
codegen_flags: <defaults>
</compile_context>

<pallas_src>
import math

import jax
import jax.numpy as jnp
from jax.experimental import pallas as pl
from jax.experimental.pallas import tpu as pltpu

HIDDEN = 256
TILE_B = 256  # multiple of 256 (v6e/v7x MXU M-dim) and of 128 (v5e MXU)


def _round_up(n, m):
    return ((n + m - 1) // m) * m


def value_net_kernel(x_ref, w1_ref, b1_ref, w2_ref, b2_ref, w3_ref, b3_ref, o_ref):
    # x tile -> bf16 (the one cast we want; MXU is bf16-native), f32 accumulate.
    x = x_ref[...].astype(jnp.bfloat16)

    h1 = jnp.dot(x, w1_ref[...], preferred_element_type=jnp.float32) + b1_ref[...]
    h1 = jnp.maximum(h1, 0.0)

    h2 = jnp.dot(h1.astype(jnp.bfloat16), w2_ref[...],
                 preferred_element_type=jnp.float32) + b2_ref[...]
    h2 = jnp.maximum(h2, 0.0)

    # Final 256 -> 1 layer on VPU (multiply) + XLU (lane reduce) instead of a
    # near-empty N=1 MXU matmul.
    v = jnp.sum(h2 * w3_ref[...], axis=-1, keepdims=True) + b3_ref[...]
    o_ref[...] = v.astype(o_ref.dtype)


def value_network_forward(x, params, tile_b=TILE_B):
    """x: [B, state_size] float32 -> [B, 1] float32."""
    w1, b1, w2, b2, w3, b3 = params
    B, S = x.shape
    H = w1.shape[1]

    # Pre-cast MXU weights to bf16 once (outside the kernel).
    w1_bf = w1.astype(jnp.bfloat16)
    w2_bf = w2.astype(jnp.bfloat16)
    # Final layer weight as a (1, H) f32 row for the VPU/XLU dot product.
    w3_row = jnp.reshape(w3, (1, H)).astype(jnp.float32)

    # MXU-friendly batch tile, but don't over-allocate for tiny batches.
    tb = min(tile_b, _round_up(B, 8))
    Bp = _round_up(B, tb)
    if Bp != B:
        x = jnp.pad(x, ((0, Bp - B), (0, 0)))

    grid = (Bp // tb,)

    # Weights/biases: constant index_map -> resident in VMEM across grid steps.
    const = lambda shape: pl.BlockSpec(shape, lambda i: (0, 0))

    out = pl.pallas_call(
        value_net_kernel,
        out_shape=jax.ShapeDtypeStruct((Bp, 1), jnp.float32),
        grid=grid,
        in_specs=[
            pl.BlockSpec((tb, S), lambda i: (i, 0)),   # x tile
            const((S, H)),                              # w1 (bf16)
            const((1, H)),                              # b1 (f32)
            const((H, H)),                              # w2 (bf16)
            const((1, H)),                              # b2 (f32)
            const((1, H)),                              # w3 row (f32)
            const((1, 1)),                              # b3 (f32)
        ],
        out_specs=pl.BlockSpec((tb, 1), lambda i: (i, 0)),
        compiler_params=pltpu.CompilerParams(
            dimension_semantics=("parallel",),
        ),
    )(x, w1_bf, b1, w2_bf, b2, w3_row, b3)

    return out[:B]


def init_params(key, state_size, hidden=HIDDEN):
    """Deterministic init mirroring nn.Linear's U(-1/sqrt(fan_in), +1/sqrt(fan_in))."""
    ks = jax.random.split(key, 6)

    def linear(kw, kb, fan_in, fan_out):
        bound = 1.0 / math.sqrt(fan_in)
        w = jax.random.uniform(kw, (fan_in, fan_out), jnp.float32, -bound, bound)
        b = jax.random.uniform(kb, (1, fan_out), jnp.float32, -bound, bound)
        return w, b

    w1, b1 = linear(ks[0], ks[1], state_size, hidden)
    w2, b2 = linear(ks[2], ks[3], hidden, hidden)
    w3, b3 = linear(ks[4], ks[5], hidden, 1)
    return (w1, b1, w2, b2, w3, b3)


def _reference(x, params):
    """Plain-JAX reference matching the kernel's bf16-input / f32-acc math."""
    w1, b1, w2, b2, w3, b3 = params
    h1 = jnp.dot(x.astype(jnp.bfloat16), w1.astype(jnp.bfloat16),
                 preferred_element_type=jnp.float32) + b1
    h1 = jnp.maximum(h1, 0.0)
    h2 = jnp.dot(h1.astype(jnp.bfloat16), w2.astype(jnp.bfloat16),
                 preferred_element_type=jnp.float32) + b2
    h2 = jnp.maximum(h2, 0.0)
    return h2 @ w3 + b3


if __name__ == "__main__":
    key = jax.random.PRNGKey(0)
    k_x, k_p, k_x2 = jax.random.split(key, 3)

    batch, state_size = 2, 8
    x = jax.random.normal(k_x, (batch, state_size), dtype=jnp.float32)
    params = init_params(k_p, state_size)

    out = value_network_forward(x, params)
    out = jax.block_until_ready(out)

    ref = _reference(x, params)
    assert out.shape == (batch, 1), out.shape
    assert jnp.allclose(out, ref, atol=1e-3, rtol=1e-3), (out, ref)

    # Also exercise the multi-step grid + batch-padding path.
    batch2 = 300
    x2 = jax.random.normal(k_x2, (batch2, state_size), dtype=jnp.float32)
    out2 = jax.block_until_ready(value_network_forward(x2, params))
    ref2 = _reference(x2, params)
    assert out2.shape == (batch2, 1), out2.shape
    assert jnp.allclose(out2, ref2, atol=1e-3, rtol=1e-3)

    print("KERNEL_OK")
</pallas_src>

<mosaic_0001>
module attributes {stable_mosaic.version = 11 : i64} {
  func.func @value_net_kernel(%arg0: i32, %arg1: memref<8x8xf32, #tpu.memory_space<vmem>>, %arg2: memref<8x256xbf16, #tpu.memory_space<vmem>>, %arg3: memref<1x256xf32, #tpu.memory_space<vmem>>, %arg4: memref<256x256xbf16, #tpu.memory_space<vmem>>, %arg5: memref<1x256xf32, #tpu.memory_space<vmem>>, %arg6: memref<1x256xf32, #tpu.memory_space<vmem>>, %arg7: memref<1x1xf32, #tpu.memory_space<vmem>>, %arg8: memref<8x1xf32, #tpu.memory_space<vmem>>) attributes {dimension_semantics = [#tpu.dimension_semantics<parallel>], iteration_bounds = array<i64: 1>, scalar_prefetch = 0 : i64, scratch_operands = 0 : i64, tpu.core_type = #tpu.core_type<tc>, window_params = [{transform_indices = @transform_0, window_bounds = array<i64: 8, 8>}, {pipeline_mode = #tpu.pipeline_mode<synchronous>, transform_indices = @transform_1, window_bounds = array<i64: 8, 256>}, {pipeline_mode = #tpu.pipeline_mode<synchronous>, transform_indices = @transform_2, window_bounds = array<i64: 1, 256>}, {pipeline_mode = #tpu.pipeline_mode<synchronous>, transform_indices = @transform_3, window_bounds = array<i64: 256, 256>}, {pipeline_mode = #tpu.pipeline_mode<synchronous>, transform_indices = @transform_4, window_bounds = array<i64: 1, 256>}, {pipeline_mode = #tpu.pipeline_mode<synchronous>, transform_indices = @transform_5, window_bounds = array<i64: 1, 256>}, {pipeline_mode = #tpu.pipeline_mode<synchronous>, transform_indices = @transform_6, window_bounds = array<i64: 1, 1>}, {transform_indices = @transform_7, window_bounds = array<i64: 8, 1>}]} {
    %c0 = arith.constant 0 : index
    %c0_0 = arith.constant 0 : index
    %0 = vector.load %arg1[%c0, %c0_0] : memref<8x8xf32, #tpu.memory_space<vmem>>, vector<8x8xf32>
    %1 = arith.truncf %0 : vector<8x8xf32> to vector<8x8xbf16>
    %c0_1 = arith.constant 0 : index
    %c0_2 = arith.constant 0 : index
    %2 = vector.load %arg2[%c0_1, %c0_2] : memref<8x256xbf16, #tpu.memory_space<vmem>>, vector<8x256xbf16>
    %cst = arith.constant dense<0.000000e+00> : vector<8x256xf32>
    %3 = tpu.matmul %1, %2, %cst {dimension_numbers = #tpu.dot_dimension_numbers<[1], [0], [0], [1], [0, 0, 1, 1], [], []>} : vector<8x8xbf16>, vector<8x256xbf16>, vector<8x256xf32> -> vector<8x256xf32>
    %c0_3 = arith.constant 0 : index
    %c0_4 = arith.constant 0 : index
    %4 = vector.load %arg3[%c0_3, %c0_4] : memref<1x256xf32, #tpu.memory_space<vmem>>, vector<1x256xf32>
    %5 = vector.broadcast %4 : vector<1x256xf32> to vector<8x256xf32>
    %6 = arith.addf %3, %5 : vector<8x256xf32>
    %cst_5 = arith.constant 0.000000e+00 : f32
    %7 = vector.broadcast %cst_5 : f32 to vector<8x256xf32>
    %8 = arith.maximumf %6, %7 : vector<8x256xf32>
    %9 = arith.truncf %8 : vector<8x256xf32> to vector<8x256xbf16>
    %c0_6 = arith.constant 0 : index
    %c0_7 = arith.constant 0 : index
    %10 = vector.load %arg4[%c0_6, %c0_7] : memref<256x256xbf16, #tpu.memory_space<vmem>>, vector<256x256xbf16>
    %cst_8 = arith.constant dense<0.000000e+00> : vector<8x256xf32>
    %11 = tpu.matmul %9, %10, %cst_8 {dimension_numbers = #tpu.dot_dimension_numbers<[1], [0], [0], [1], [0, 0, 1, 1], [], []>} : vector<8x256xbf16>, vector<256x256xbf16>, vector<8x256xf32> -> vector<8x256xf32>
    %c0_9 = arith.constant 0 : index
    %c0_10 = arith.constant 0 : index
    %12 = vector.load %arg5[%c0_9, %c0_10] : memref<1x256xf32, #tpu.memory_space<vmem>>, vector<1x256xf32>
    %13 = vector.broadcast %12 : vector<1x256xf32> to vector<8x256xf32>
    %14 = arith.addf %11, %13 : vector<8x256xf32>
    %cst_11 = arith.constant 0.000000e+00 : f32
    %15 = vector.broadcast %cst_11 : f32 to vector<8x256xf32>
    %16 = arith.maximumf %14, %15 : vector<8x256xf32>
    %c0_12 = arith.constant 0 : index
    %c0_13 = arith.constant 0 : index
    %17 = vector.load %arg6[%c0_12, %c0_13] : memref<1x256xf32, #tpu.memory_space<vmem>>, vector<1x256xf32>
    %18 = vector.broadcast %17 : vector<1x256xf32> to vector<8x256xf32>
    %19 = arith.mulf %16, %18 : vector<8x256xf32>
    %cst_14 = arith.constant dense<0.000000e+00> : vector<8xf32>
    %20 = vector.multi_reduction <add>, %19, %cst_14 [1] : vector<8x256xf32> to vector<8xf32>
    %21 = vector.shape_cast %20 : vector<8xf32> to vector<8x1xf32>
    %c0_15 = arith.constant 0 : index
    %c0_16 = arith.constant 0 : index
    %22 = vector.load %arg7[%c0_15, %c0_16] : memref<1x1xf32, #tpu.memory_space<vmem>>, vector<1x1xf32>
    %23 = vector.broadcast %22 : vector<1x1xf32> to vector<8x1xf32>
    %24 = arith.addf %21, %23 : vector<8x1xf32>
    %c0_17 = arith.constant 0 : index
    %c0_18 = arith.constant 0 : index
    %25 = vector.load %arg8[%c0_17, %c0_18] : memref<8x1xf32, #tpu.memory_space<vmem>>, vector<8x1xf32>
    tpu.vector_store %arg8[%c0_17, %c0_18], %24 {strides = array<i32>} : memref<8x1xf32, #tpu.memory_space<vmem>>, vector<8x1xf32>,
    return
  }
  func.func @transform_0(%arg0: i32) -> (i32, i32) {
    %c0_i32 = arith.constant 0 : i32
    %c0_i32_0 = arith.constant 0 : i32
    return %arg0, %c0_i32 : i32, i32
  }
  func.func @transform_1(%arg0: i32) -> (i32, i32) {
    %c0_i32 = arith.constant 0 : i32
    %c0_i32_0 = arith.constant 0 : i32
    %c0_i32_1 = arith.constant 0 : i32
    return %c0_i32, %c0_i32_0 : i32, i32
  }
  func.func @transform_2(%arg0: i32) -> (i32, i32) {
    %c0_i32 = arith.constant 0 : i32
    %c0_i32_0 = arith.constant 0 : i32
    %c0_i32_1 = arith.constant 0 : i32
    return %c0_i32, %c0_i32_0 : i32, i32
  }
  func.func @transform_3(%arg0: i32) -> (i32, i32) {
    %c0_i32 = arith.constant 0 : i32
    %c0_i32_0 = arith.constant 0 : i32
    %c0_i32_1 = arith.constant 0 : i32
    return %c0_i32, %c0_i32_0 : i32, i32
  }
  func.func @transform_4(%arg0: i32) -> (i32, i32) {
    %c0_i32 = arith.constant 0 : i32
    %c0_i32_0 = arith.constant 0 : i32
    %c0_i32_1 = arith.constant 0 : i32
    return %c0_i32, %c0_i32_0 : i32, i32
  }
  func.func @transform_5(%arg0: i32) -> (i32, i32) {
    %c0_i32 = arith.constant 0 : i32
    %c0_i32_0 = arith.constant 0 : i32
    %c0_i32_1 = arith.constant 0 : i32
    return %c0_i32, %c0_i32_0 : i32, i32
  }
  func.func @transform_6(%arg0: i32) -> (i32, i32) {
    %c0_i32 = arith.constant 0 : i32
    %c0_i32_0 = arith.constant 0 : i32
    %c0_i32_1 = arith.constant 0 : i32
    return %c0_i32, %c0_i32_0 : i32, i32
  }
  func.func @transform_7(%arg0: i32) -> (i32, i32) {
    %c0_i32 = arith.constant 0 : i32
    %c0_i32_0 = arith.constant 0 : i32
    return %arg0, %c0_i32 : i32, i32
  }
}

</mosaic_0001>

<bundles_post_ra>
// kernel: tpu_custom_call.1
= control target key start
LH: loop header
LB: loop body
LE: loop exit
PB: predicated region body
PF: predicated region fallthrough
CT: control target
= control target key end

     0   :  { %s682_s0 = inlined_call_operand.hbm [shape: f32[8,8], index: 0, kind: input, shape index: {}]   ;;  %s683_s1 = inlined_call_operand.hbm [shape: bf16[8,256], index: 1, kind: input, shape index: {}]   ;;  %s684_s2 = inlined_call_operand.vmem [shape: f32[1,256], index: 2, kind: input, shape index: {}]   ;;  %s685_s3 = inlined_call_operand.hbm [shape: bf16[256,256], index: 3, kind: input, shape index: {}]   ;;  %s686_s4 = inlined_call_operand.vmem [shape: f32[1,256], index: 4, kind: input, shape index: {}]   ;;  %s687_s5 = inlined_call_operand.vmem [shape: f32[1,256], index: 5, kind: input, shape index: {}]   ;;  %s688_s6 = inlined_call_operand.<no memory space> [shape: f32[1,1], index: 6, kind: input, shape index: {}]   ;;  %s689_s7 = inlined_call_operand.vmem [shape: f32[8,1], index: 7, kind: output, shape index: {}]  }
   0x1   :  { %v12_v0 = vstv %s688_s6 }
   0x2   :  { %13 = vst [vmem:[#allocation2] sm:$0x1] %v12_v0 }
   0x3   :  { %14 = vsyncpa [#allocation4], 0 }
   0x4   :  { %15 = vsyncpa [#allocation6], 0  ;;  %s585_s26 = smov [#allocation5]   ;;  %s586_s28 = smov [#allocation3]  }
   0x5   :  { %s32_s27 = sshll.u32 %s585_s26, 4  ;;  %s22_s29 = sshll.u32 %s586_s28, 4  ;;  %s33_s27 = int_to_ptr.vmem [resolvable:$true] %s32_s27  ;;  %s23_s29 = int_to_ptr.vmem [resolvable:$true] %s22_s29 }
   0x6   :  { %s515_s9 = scalar_lea.hbm %s683_s1, 128 }
   0x7   :  { %p516_p0 = scmp.ne.s32.totalorder %s683_s1, %s515_s9  ;;  %p519_p1 = scmp.lt.u32.totalorder %s515_s9, %s683_s1 }
   0x9   :  { %p521_p2 = pnand %p519_p1, %p516_p0 }
   0xb   :  { %524 = shalt.err (!%p521_p2)
}
   0xc   :  { %s525_s6 = scalar_lea.vmem %s33_s27, 128  ;;  %p530_p4 = scmp.lt.s32.totalorder %s33_s27, %s33_s27 }
   0xd   :  { %p526_p3 = scmp.ne.s32.totalorder %s33_s27, %s525_s6  ;;  %p531_p5 = scmp.lt.s32.totalorder %s525_s6, %s525_s6 }
   0xf   :  { %p532_p6 = por %p531_p5, %p530_p4 }
  0x11   :  { %p533_p7 = pnand %p532_p6, %p526_p3 }
  0x13   :  { %536 = shalt.err (!%p533_p7)
}
  0x14   :  { %35 = dma.hbm_to_vmem [thread:$0]  %s683_s1, 128, %s33_s27, [#allocation6]  }
  0x15   :  { %s537_s18 = scalar_lea.hbm %s682_s0, 128 }
  0x16   :  { %p538_p8 = scmp.ne.s32.totalorder %s682_s0, %s537_s18  ;;  %p541_p9 = scmp.lt.u32.totalorder %s537_s18, %s682_s0 }
  0x18   :  { %p543_p10 = pnand %p541_p9, %p538_p8 }
  0x1a   :  { %546 = shalt.err (!%p543_p10)
}
  0x1b   :  { %s547_s23 = scalar_lea.vmem %s23_s29, 128  ;;  %p552_p12 = scmp.lt.s32.totalorder %s23_s29, %s23_s29 }
  0x1c   :  { %p548_p11 = scmp.ne.s32.totalorder %s23_s29, %s547_s23  ;;  %p553_p13 = scmp.lt.s32.totalorder %s547_s23, %s547_s23 }
  0x1e   :  { %p554_p0 = por %p553_p13, %p552_p12 }
  0x20   :  { %p555_p1 = pnand %p554_p0, %p548_p11 }
  0x22   :  { %558 = shalt.err (!%p555_p1)
}
  0x23   :  { %25 = dma.hbm_to_vmem [thread:$0]  %s682_s0, 128, %s23_s29, [#allocation4]  }
  0x24   :  { %s587_s25 = smov [#allocation7]   ;;  %s559_s30 = scalar_lea.hbm %s685_s3, 4096 }
  0x25   :  { %s43_s26 = sshll.u32 %s587_s25, 4  ;;  %p560_p2 = scmp.ne.s32.totalorder %s685_s3, %s559_s30  ;;  %s44_s26 = int_to_ptr.vmem [resolvable:$true] %s43_s26 }
  0x26   :  { %p563_p3 = scmp.lt.u32.totalorder %s559_s30, %s685_s3 }
  0x28   :  { %p565_p4 = pnand %p563_p3, %p560_p2 }
  0x2a   :  { %568 = shalt.err (!%p565_p4)
}
  0x2b   :  { %s569_s12 = scalar_lea.vmem %s44_s26, 4096  ;;  %p574_p6 = scmp.lt.s32.totalorder %s44_s26, %s44_s26 }
  0x2c   :  { %p570_p5 = scmp.ne.s32.totalorder %s44_s26, %s569_s12  ;;  %p575_p7 = scmp.lt.s32.totalorder %s569_s12, %s569_s12 }
  0x2e   :  { %p576_p8 = por %p575_p7, %p574_p6 }
  0x30   :  { %p577_p9 = pnand %p576_p8, %p570_p5 }
  0x32   :  { %580 = shalt.err (!%p577_p9)
}
  0x33   :  { %s588_s0 = smov 128   ;;  %s589_s29 = smov 8  }
  0x34   :  { %49 = dma.hbm_to_vmem [thread:$0]  %s685_s3, 4096, %s44_s26, [#allocation6], %s588_s0, %s588_s0, %s589_s29  }
  0x35   :  { %581 = dma.done.wait [#allocation4], 128  }
  0x36   :  { %582 = vsyncadd [#allocation4], 4294967168 }
  0x37   :  { %583 = dma.done.wait [#allocation6], 4224  }
  0x38   :  { %584 = vsyncadd [#allocation6], 4294963072  ;;  %v590_v1 = vmov 0   ;;  %v68_v2 = vld [vmem:[#allocation5] sm:$0xff]  ;;  %vm90_vm0 = vcmask 1043456   ;;  %v66_v3 = vld [vmem:[#allocation3] sm:$0xff]  ;;  %v71_v40 = vlaneseq }
  0x39   :  { %129 = vmatprep.mubr.bf16.mxu0 %v590_v1  ;;  %v423_v4 = vcombine.high %v68_v2, %v68_v2  ;;  %v422_v5 = vcombine.low %v68_v2, %v68_v2  ;;  %v467_v6 = vld [vmem:[#allocation7 + $0x4] ss:$8 sps:$4 sm:$0xff]   ;;  %v469_v7 = vld [vmem:[#allocation7] ss:$8 sps:$4 sm:$0xff]   ;;  %v470_v8 = vld [vmem:[#allocation7 + $0x14] ss:$8 sps:$4 sm:$0xff]   ;;  %v67_v10 = vpack.c.bf16 %v66_v3, %v66_v3 }
  0x3a   :  { %346 = vmatprep.subr.bf16.mxu1 %v467_v6  ;;  %vm86_vm1 = vcmask 64512   ;;  %v472_v11 = vld [vmem:[#allocation7 + $0x10] ss:$8 sps:$4 sm:$0xff]   ;;  %v473_v12 = vld [vmem:[#allocation7 + $0x24] ss:$8 sps:$4 sm:$0xff]   ;;  %v72_v41 = vshrl.u32 %v71_v40, 7 }
  0x3b   :  { %424 = vmatprep.subr.msk.bf16.mxu0 %vm90_vm0, %v423_v4  ;;  %v92_v9 = vsel %vm90_vm0, %v422_v5, 0  ;;  %347 = vmatpush1.bf16.msra.mxu1 %v469_v7  ;;  %v475_v13 = vld [vmem:[#allocation7 + $0x20] ss:$8 sps:$4 sm:$0xff]   ;;  %v476_v14 = vld [vmem:[#allocation7 + $0x34] ss:$8 sps:$4 sm:$0xff]   ;;  %vm414_vm2 = vcmask 7168  }
  0x3c   :  { %98 = vmatpush1.bf16.msra.mxu0 %v92_v9  ;;  %348 = vmatprep.subr.bf16.mxu1 %v470_v8  ;;  %v478_v15 = vld [vmem:[#allocation7 + $0x30] ss:$8 sps:$4 sm:$0xff]   ;;  %v479_v16 = vld [vmem:[#allocation7 + $0x44] ss:$8 sps:$4 sm:$0xff]   ;;  %v481_v17 = vld [vmem:[#allocation7 + $0x40] ss:$8 sps:$4 sm:$0xff]  }
  0x3d   :  { %v482_v18 = vld [vmem:[#allocation7 + $0x54] ss:$8 sps:$4 sm:$0xff]   ;;  %v484_v19 = vld [vmem:[#allocation7 + $0x50] ss:$8 sps:$4 sm:$0xff]   ;;  %v485_v20 = vld [vmem:[#allocation7 + $0x64] ss:$8 sps:$4 sm:$0xff]  }
  0x3e   :  { %v487_v21 = vld [vmem:[#allocation7 + $0x60] ss:$8 sps:$4 sm:$0xff]   ;;  %v488_v22 = vld [vmem:[#allocation7 + $0x74] ss:$8 sps:$4 sm:$0xff]   ;;  %v490_v23 = vld [vmem:[#allocation7 + $0x70] ss:$8 sps:$4 sm:$0xff]  }
  0x3f   :  { %425 = vmatmul.mubr.msk.bf16.vlgmr.msra.gmra.mrb[0].mxu0 %vm86_vm1, %v67_v10  ;;  %349 = vmatpush1.bf16.msra.mxu1 %v472_v11  ;;  %v491_v24 = vld [vmem:[#allocation7 + $0x84] ss:$8 sps:$4 sm:$0xff]   ;;  %v493_v25 = vld [vmem:[#allocation7 + $0x80] ss:$8 sps:$4 sm:$0xff]   ;;  %v494_v26 = vld [vmem:[#allocation7 + $0x94] ss:$8 sps:$4 sm:$0xff]  }
  0x40   :  { %350 = vmatprep.subr.bf16.mxu1 %v473_v12  ;;  %v496_v27 = vld [vmem:[#allocation7 + $0x90] ss:$8 sps:$4 sm:$0xff]   ;;  %v497_v28 = vld [vmem:[#allocation7 + $0xa4] ss:$8 sps:$4 sm:$0xff]   ;;  %v499_v29 = vld [vmem:[#allocation7 + $0xa0] ss:$8 sps:$4 sm:$0xff]  }
  0x41   :  { %v500_v30 = vld [vmem:[#allocation7 + $0xb4] ss:$8 sps:$4 sm:$0xff]   ;;  %v502_v31 = vld [vmem:[#allocation7 + $0xb0] ss:$8 sps:$4 sm:$0xff]   ;;  %v503_v32 = vld [vmem:[#allocation7 + $0xc4] ss:$8 sps:$4 sm:$0xff]  }
  0x42   :  { %v505_v33 = vld [vmem:[#allocation7 + $0xc0] ss:$8 sps:$4 sm:$0xff]   ;;  %v506_v34 = vld [vmem:[#allocation7 + $0xd4] ss:$8 sps:$4 sm:$0xff]   ;;  %v508_v35 = vld [vmem:[#allocation7 + $0xd0] ss:$8 sps:$4 sm:$0xff]  }
  0x43   :  { %351 = vmatpush1.bf16.msra.mxu1 %v475_v13  ;;  %v509_v36 = vld [vmem:[#allocation7 + $0xe4] ss:$8 sps:$4 sm:$0xff]   ;;  %v511_v37 = vld [vmem:[#allocation7 + $0xe0] ss:$8 sps:$4 sm:$0xff]   ;;  %v512_v38 = vld [vmem:[#allocation7 + $0xf4] ss:$8 sps:$4 sm:$0xff]  }
  0x44   :  { %352 = vmatprep.subr.bf16.mxu1 %v476_v14  ;;  %v514_v39 = vld [vmem:[#allocation7 + $0xf0] ss:$8 sps:$4 sm:$0xff]   ;;  %v73_v42 = vsub.s32 0, %v72_v41  ;;  %v77_v44 = vsub.s32 1, %v72_v41  ;;  %v458_v10 = vld [vmem:[#allocation2] ss:$0 sm:$0xff] }
  0x45   :  { %v69_v43 = vld [vmem:[%s684_s2] sm:$0x3] }
  0x46   :  { %v74_v45 = vrot.slane %v69_v43, %v73_v42  ;;  %v78_v46 = vrot.slane %v69_v43, %v77_v44  ;;  %v174_v57 = vld [vmem:[%s686_s4] sm:$0x3] }
  0x47   :  { %353 = vmatpush1.bf16.msra.mxu1 %v478_v15  ;;  %v179_v58 = vrot.slane %v174_v57, %v73_v42  ;;  %v183_v59 = vrot.slane %v174_v57, %v77_v44  ;;  %v389_v60 = vld [vmem:[%s687_s5] sm:$0x3] }
  0x48   :  { %354 = vmatprep.subr.bf16.mxu1 %v479_v16  ;;  %v394_v0 = vrot.slane %v389_v60, %v73_v42  ;;  %v398_v3 = vrot.slane %v389_v60, %v77_v44 }
  0x4b   :  { %355 = vmatpush1.bf16.msra.mxu1 %v481_v17 }
  0x4c   :  { %356 = vmatprep.subr.bf16.mxu1 %v482_v18 }
  0x4f   :  { %357 = vmatpush1.bf16.msra.mxu1 %v484_v19 }
  0x50   :  { %358 = vmatprep.subr.bf16.mxu1 %v485_v20 }
  0x53   :  { %359 = vmatpush1.bf16.msra.mxu1 %v487_v21 }
  0x54   :  { %360 = vmatprep.subr.bf16.mxu1 %v488_v22 }
  0x57   :  { %361 = vmatpush1.bf16.msra.mxu1 %v490_v23 }
  0x58   :  { %362 = vmatprep.subr.bf16.mxu1 %v491_v24 }
  0x5b   :  { %363 = vmatpush1.bf16.msra.mxu1 %v493_v25 }
  0x5c   :  { %364 = vmatprep.subr.bf16.mxu1 %v494_v26 }
  0x5f   :  { %365 = vmatpush1.bf16.msra.mxu1 %v496_v27 }
  0x60   :  { %366 = vmatprep.subr.bf16.mxu1 %v497_v28 }
  0x63   :  { %367 = vmatpush1.bf16.msra.mxu1 %v499_v29 }
  0x64   :  { %368 = vmatprep.subr.bf16.mxu1 %v500_v30 }
  0x67   :  { %369 = vmatpush1.bf16.msra.mxu1 %v502_v31 }
  0x68   :  { %370 = vmatprep.subr.bf16.mxu1 %v503_v32 }
  0x6b   :  { %371 = vmatpush1.bf16.msra.mxu1 %v505_v33 }
  0x6c   :  { %372 = vmatprep.subr.bf16.mxu1 %v506_v34 }
  0x6f   :  { %373 = vmatpush1.bf16.msra.mxu1 %v508_v35 }
  0x70   :  { %374 = vmatprep.subr.bf16.mxu1 %v509_v36 }
  0x73   :  { %375 = vmatpush1.bf16.msra.mxu1 %v511_v37 }
  0x74   :  { %376 = vmatprep.subr.bf16.mxu1 %v512_v38 }
  0x77   :  { %377 = vmatpush1.bf16.msra.mxu1 %v514_v39 }
 0x112   :  { %v131_v47 = vpop.f32.mrb[0].mxu0 }
 0x113   :  { %v132_v48 = vadd.f32 %v131_v47, %v74_v45  ;;  %v133_v49 = vpop.f32.mrb[1].mxu0 }
 0x114   :  { %v134_v50 = vadd.f32 %v133_v49, %v78_v46  ;;  %v135_v51 = vpop.f32.mrb[2].mxu0 }
 0x115   :  { %v138_v52 = vmax.f32 %v132_v48, 0.0  ;;  %v136_v53 = vpop.f32.mrb[3].mxu0 }
 0x116   :  { %v139_v54 = vmax.f32 %v134_v50, 0.0 }
 0x117   :  { %v140_v56 = vpack.c.bf16 %v138_v52, %v138_v52 }
 0x118   :  { %v141_v55 = vpack.c.bf16 %v139_v54, %v139_v54 }
 0x11a   :  { %378 = vmatprep.mubr.bf16.mxu1 %v141_v55 }
 0x11b   :  { %379 = vmatmul.mubr.bf16.vlgmr.msra.gmra.mrb[0].mxu1 %v140_v56 }
 0x1ee   :  { %v380_v61 = vpop.f32.mrb[0].mxu1 }
 0x1ef   :  { %v381_v62 = vadd.f32 %v380_v61, %v179_v58  ;;  %v382_v63 = vpop.f32.mrb[1].mxu1 }
 0x1f0   :  { %v383_v1 = vadd.f32 %v382_v63, %v183_v59  ;;  %v384_v2 = vpop.f32.mrb[2].mxu1 }
 0x1f1   :  { %v387_v4 = vmax.f32 %v381_v62, 0.0  ;;  %v385_v5 = vpop.f32.mrb[3].mxu1 }
 0x1f2   :  { %v388_v6 = vmax.f32 %v383_v1, 0.0 }
 0x1f3   :  { %v401_v7 = vmul.f32 %v394_v0, %v387_v4 }
 0x1f4   :  { %v402_v8 = vmul.f32 %v398_v3, %v388_v6 }
 0x1f6   :  { %v403_v9 = vadd.f32 %v402_v8, %v401_v7 }
 0x1f8   :  { %404 = vadd.xlane.f32.xlu0 %v403_v9 }
 0x285   :  { %v405_v11 = vpop.xlane.xlu0 %404 }
 0x286   :  { %v413_v12 = vadd.f32 %v458_v10, %v405_v11 }
 0x288   :  { %415 = vst.msk [vmem:[%s689_s7] sm:$0xff] %vm414_vm2, %v413_v12 }
 0x289   :  { %420 = vsyncpa [#allocation4], 1 }
 0x28a   :  { %421 = vsyncpa [#allocation6], 1 }

</bundles_post_ra>
